<compile_context>
chip_gen: v7x
topology: tpu7x:2x2x1
jax: 0.10.0
libtpu: 0.0.40
codegen_flags: <defaults>
</compile_context>

<pallas_src>
import jax
import jax.numpy as jnp
from jax import lax
from jax.experimental import pallas as pl
from jax.experimental.pallas import tpu as pltpu

# ---------------- module hyper-params (defaults of InterFace_Stateful) ------
WORD_SIZE = 32
INTF_SIZE = 100
NUM_READS = 1
WRITE_HEADS = 1

# Segments in the exact order of the PyTorch module's return list.
_RETURN_ORDER = [
    ("read_keys",  NUM_READS * WORD_SIZE,   "id"),
    ("read_strn",  NUM_READS,               "id"),
    ("write_key",  WRITE_HEADS * WORD_SIZE, "id"),
    ("write_str",  WRITE_HEADS,             "id"),
    ("erase_vec",  WRITE_HEADS * WORD_SIZE, "sigmoid"),
    ("write_vec",  WRITE_HEADS * WORD_SIZE, "id"),
    ("free_gates", NUM_READS,               "sigmoid"),
    ("alloc_gate", WRITE_HEADS,             "sigmoid"),
    ("write_gate", WRITE_HEADS,             "sigmoid"),
    ("read_modes", NUM_READS * 3,           "softmax"),
]

# Fused column layout, sorted by activation type so each activation is one
# contiguous static column range: [identity | sigmoid | softmax | padding].
_FUSED_ORDER = (
    [s for s in _RETURN_ORDER if s[2] == "id"]
    + [s for s in _RETURN_ORDER if s[2] == "sigmoid"]
    + [s for s in _RETURN_ORDER if s[2] == "softmax"]
)

_LAYOUT = {}
_off = 0
for _name, _sz, _act in _FUSED_ORDER:
    _LAYOUT[_name] = (_off, _off + _sz)
    _off += _sz
TOTAL_OUT = _off                                     # 136 at default sizes

_sig_ranges = [_LAYOUT[n] for n, _, a in _FUSED_ORDER if a == "sigmoid"]
SIG_LO = min(r[0] for r in _sig_ranges)              # sigmoid block start
SIG_HI = max(r[1] for r in _sig_ranges)              # sigmoid block end
SM_LO = _LAYOUT["read_modes"][0]                     # softmax block start


def _round_up(x, m):
    return ((x + m - 1) // m) * m


O_PAD = _round_up(TOTAL_OUT, 128)                    # 136 -> 256, lane-dense


# ---------------------------- Pallas kernel ---------------------------------
def _interface_kernel(x_ref, w_ref, b_ref, out_ref):
    # Fused matmul + bias: (TB, F) @ (F, O_PAD) on the MXU, f32 accumulate.
    z = jnp.dot(x_ref[...], w_ref[...], preferred_element_type=jnp.float32)
    z = z + b_ref[...]                                # (1, O_PAD) broadcast

    # Column index built in-kernel: no mask inputs, no extra DMAs.
    col = lax.broadcasted_iota(jnp.int32, (1, O_PAD), 1)

    # Sigmoid block = one contiguous static range (EUP logistic).
    sig_mask = (col >= SIG_LO) & (col < SIG_HI)
    out = jnp.where(sig_mask, jax.nn.sigmoid(z), z)

    # read_modes: softmax per read head over its own 3 columns.  Static
    # Python loop (fully unrolled at trace time); correct for NUM_READS > 1.
    for g in range(NUM_READS):
        lo = SM_LO + 3 * g
        gmask = (col >= lo) & (col < lo + 3)
        zg = jnp.where(gmask, z, -jnp.inf)
        zmax = jnp.max(zg, axis=-1, keepdims=True)
        ez = jnp.where(gmask, jnp.exp(zg - zmax), 0.0)
        denom = jnp.sum(ez, axis=-1, keepdims=True)
        soft = ez * pl.reciprocal(denom, approx=True)  # EUP vrcp, ~free
        out = jnp.where(gmask, soft, out)

    out_ref[...] = out.astype(out_ref.dtype)


# ------------------------------- wrapper -------------------------------------
@jax.jit
def interface_forward(x, w_pad, b_pad):
    """x: (B, INTF_SIZE) f32 -> fused, lane-padded output (B, O_PAD) f32.

    For real workloads fold many DNC timesteps into the batch axis before
    calling: the kernel is launch-overhead bound at tiny B, and the batch
    grid axis is 'parallel' so large B shards across TensorCores (v7x).
    """
    B, F = x.shape
    assert w_pad.shape == (F, O_PAD) and b_pad.shape == (1, O_PAD)

    TB = min(256, _round_up(B, 8))                   # batch tile (sublane-aligned)
    B_pad = _round_up(B, TB)
    if B_pad != B:
        x = jnp.pad(x, ((0, B_pad - B), (0, 0)))

    n_trans = B_pad * ((SIG_HI - SIG_LO) + 4 * NUM_READS)   # sigmoid + exp + rcp
    cost = pl.CostEstimate(
        flops=2 * B_pad * F * O_PAD,
        transcendentals=n_trans,
        bytes_accessed=4 * (B_pad * F + F * O_PAD + O_PAD + B_pad * O_PAD),
    )

    fused = pl.pallas_call(
        _interface_kernel,
        out_shape=jax.ShapeDtypeStruct((B_pad, O_PAD), jnp.float32),
        grid=(B_pad // TB,),
        in_specs=[
            pl.BlockSpec((TB, F), lambda i: (i, 0)),     # x tile
            pl.BlockSpec((F, O_PAD), lambda i: (0, 0)),  # fused W (tiny, resident)
            pl.BlockSpec((1, O_PAD), lambda i: (0, 0)),  # fused bias
        ],
        out_specs=pl.BlockSpec((TB, O_PAD), lambda i: (i, 0)),
        compiler_params=pltpu.CompilerParams(
            dimension_semantics=("parallel",),
        ),
        cost_estimate=cost,
    )(x, w_pad, b_pad)
    return fused[:B]


def split_outputs(fused):
    """Split fused (B, O_PAD) into the 10 heads, in the module's return order
    (also drops the lane padding)."""
    outs = []
    for name, _, _ in _RETURN_ORDER:
        lo, hi = _LAYOUT[name]
        outs.append(fused[:, lo:hi])
    return outs


# ------------------------- parameter construction ---------------------------
def init_params(key):
    """PyTorch nn.Linear default init (U[-1/sqrt(fan_in), +bound]) per head,
    written into the fused, activation-sorted, lane-padded layout."""
    bound = 1.0 / float(INTF_SIZE) ** 0.5
    W = jnp.zeros((INTF_SIZE, O_PAD), jnp.float32)
    b = jnp.zeros((1, O_PAD), jnp.float32)
    for name, out_sz, _ in _FUSED_ORDER:
        lo, hi = _LAYOUT[name]
        key, kw, kb = jax.random.split(key, 3)
        w_i = jax.random.uniform(kw, (INTF_SIZE, out_sz), jnp.float32, -bound, bound)
        b_i = jax.random.uniform(kb, (1, out_sz), jnp.float32, -bound, bound)
        W = W.at[:, lo:hi].set(w_i)
        b = b.at[:, lo:hi].set(b_i)
    return W, b


# ------------------------------ reference -----------------------------------
def reference_forward(x, W, b):
    """Pure-JAX reference with exact activations, module return order."""
    B = x.shape[0]
    z = x @ W + b
    outs = []
    for name, _, act in _RETURN_ORDER:
        lo, hi = _LAYOUT[name]
        seg = z[:, lo:hi]
        if act == "sigmoid":
            seg = jax.nn.sigmoid(seg)
        elif act == "softmax":
            seg = jax.nn.softmax(seg.reshape(B, NUM_READS, 3), axis=-1)
            seg = seg.reshape(B, NUM_READS * 3)
        outs.append(seg)
    return outs


# --------------------------------- main --------------------------------------
if __name__ == "__main__":
    key = jax.random.PRNGKey(0)
    key, kx, kp = jax.random.split(key, 3)

    batch = 8   # small demo; in the real DNC fold many timesteps into this axis
    x = jax.random.normal(kx, (batch, INTF_SIZE), jnp.float32)
    W, b = init_params(kp)

    fused = jax.block_until_ready(interface_forward(x, W, b))
    outs = split_outputs(fused)

    refs = reference_forward(x, W, b)
    for (name, _, act), got, ref in zip(_RETURN_ORDER, outs, refs):
        assert got.shape == ref.shape, (name, got.shape, ref.shape)
        # approx EUP reciprocal only touches the softmax columns
        tol = 2e-3 if act == "softmax" else 1e-5
        assert jnp.allclose(got, ref, atol=tol, rtol=tol), name

    print("KERNEL_OK")
</pallas_src>

<mosaic_0001>
module attributes {stable_mosaic.version = 11 : i64} {
  func.func @_interface_kernel(%arg0: i32, %arg1: memref<8x100xf32, #tpu.memory_space<vmem>>, %arg2: memref<100x256xf32, #tpu.memory_space<vmem>>, %arg3: memref<1x256xf32, #tpu.memory_space<vmem>>, %arg4: memref<8x256xf32, #tpu.memory_space<vmem>>) attributes {dimension_semantics = [#tpu.dimension_semantics<parallel>], iteration_bounds = array<i64: 1>, scalar_prefetch = 0 : i64, scratch_operands = 0 : i64, tpu.core_type = #tpu.core_type<tc>, window_params = [{transform_indices = @transform_0, window_bounds = array<i64: 8, 100>}, {pipeline_mode = #tpu.pipeline_mode<synchronous>, transform_indices = @transform_1, window_bounds = array<i64: 100, 256>}, {pipeline_mode = #tpu.pipeline_mode<synchronous>, transform_indices = @transform_2, window_bounds = array<i64: 1, 256>}, {transform_indices = @transform_3, window_bounds = array<i64: 8, 256>}]} {
    %c0 = arith.constant 0 : index
    %c0_0 = arith.constant 0 : index
    %0 = vector.load %arg1[%c0, %c0_0] : memref<8x100xf32, #tpu.memory_space<vmem>>, vector<8x100xf32>
    %c0_1 = arith.constant 0 : index
    %c0_2 = arith.constant 0 : index
    %1 = vector.load %arg2[%c0_1, %c0_2] : memref<100x256xf32, #tpu.memory_space<vmem>>, vector<100x256xf32>
    %cst = arith.constant dense<0.000000e+00> : vector<8x256xf32>
    %2 = tpu.matmul %0, %1, %cst {dimension_numbers = #tpu.dot_dimension_numbers<[1], [0], [0], [1], [0, 0, 1, 1], [], []>} : vector<8x100xf32>, vector<100x256xf32>, vector<8x256xf32> -> vector<8x256xf32>
    %c0_3 = arith.constant 0 : index
    %c0_4 = arith.constant 0 : index
    %3 = vector.load %arg3[%c0_3, %c0_4] : memref<1x256xf32, #tpu.memory_space<vmem>>, vector<1x256xf32>
    %4 = vector.broadcast %3 : vector<1x256xf32> to vector<8x256xf32>
    %5 = arith.addf %2, %4 : vector<8x256xf32>
    %6 = tpu.iota {dimensions = array<i32: 1>} : vector<1x256xi32>
    %c98_i32 = arith.constant 98 : i32
    %7 = vector.broadcast %c98_i32 : i32 to vector<1x256xi32>
    %8 = arith.cmpi sge, %6, %7 : vector<1x256xi32>
    %c133_i32 = arith.constant 133 : i32
    %9 = vector.broadcast %c133_i32 : i32 to vector<1x256xi32>
    %10 = arith.cmpi slt, %6, %9 : vector<1x256xi32>
    %11 = arith.andi %8, %10 : vector<1x256xi1>
    %12 = arith.negf %5 : vector<8x256xf32>
    %13 = math.exp %12 : vector<8x256xf32>
    %cst_5 = arith.constant 1.000000e+00 : f32
    %14 = vector.broadcast %cst_5 : f32 to vector<8x256xf32>
    %15 = arith.addf %14, %13 : vector<8x256xf32>
    %16 = arith.divf %14, %15 : vector<8x256xf32>
    %17 = vector.shape_cast %11 : vector<1x256xi1> to vector<1x256xi1>
    %18 = vector.broadcast %17 : vector<1x256xi1> to vector<8x256xi1>
    %19 = arith.select %18, %16, %5 : vector<8x256xi1>, vector<8x256xf32>
    %c133_i32_6 = arith.constant 133 : i32
    %20 = vector.broadcast %c133_i32_6 : i32 to vector<1x256xi32>
    %21 = arith.cmpi sge, %6, %20 : vector<1x256xi32>
    %c136_i32 = arith.constant 136 : i32
    %22 = vector.broadcast %c136_i32 : i32 to vector<1x256xi32>
    %23 = arith.cmpi slt, %6, %22 : vector<1x256xi32>
    %24 = arith.andi %21, %23 : vector<1x256xi1>
    %cst_7 = arith.constant 0xFF800000 : f32
    %25 = vector.shape_cast %24 : vector<1x256xi1> to vector<1x256xi1>
    %26 = vector.broadcast %25 : vector<1x256xi1> to vector<8x256xi1>
    %27 = vector.broadcast %cst_7 : f32 to vector<8x256xf32>
    %28 = arith.select %26, %5, %27 : vector<8x256xi1>, vector<8x256xf32>
    %cst_8 = arith.constant dense<0xFF800000> : vector<8xf32>
    %29 = vector.multi_reduction <maximumf>, %28, %cst_8 [1] : vector<8x256xf32> to vector<8xf32>
    %30 = vector.shape_cast %29 : vector<8xf32> to vector<8x1xf32>
    %31 = vector.broadcast %30 : vector<8x1xf32> to vector<8x256xf32>
    %32 = arith.subf %28, %31 : vector<8x256xf32>
    %33 = math.exp %32 : vector<8x256xf32>
    %cst_9 = arith.constant 0.000000e+00 : f32
    %34 = vector.shape_cast %24 : vector<1x256xi1> to vector<1x256xi1>
    %35 = vector.broadcast %34 : vector<1x256xi1> to vector<8x256xi1>
    %36 = vector.broadcast %cst_9 : f32 to vector<8x256xf32>
    %37 = arith.select %35, %33, %36 : vector<8x256xi1>, vector<8x256xf32>
    %cst_10 = arith.constant dense<0.000000e+00> : vector<8xf32>
    %38 = vector.multi_reduction <add>, %37, %cst_10 [1] : vector<8x256xf32> to vector<8xf32>
    %39 = vector.shape_cast %38 : vector<8xf32> to vector<8x1xf32>
    %40 = tpu.reciprocal %39 {approx = true} : vector<8x1xf32> -> vector<8x1xf32>
    %41 = vector.broadcast %40 : vector<8x1xf32> to vector<8x256xf32>
    %42 = arith.mulf %37, %41 : vector<8x256xf32>
    %43 = vector.shape_cast %24 : vector<1x256xi1> to vector<1x256xi1>
    %44 = vector.broadcast %43 : vector<1x256xi1> to vector<8x256xi1>
    %45 = arith.select %44, %42, %19 : vector<8x256xi1>, vector<8x256xf32>
    %c0_11 = arith.constant 0 : index
    %c0_12 = arith.constant 0 : index
    %46 = vector.load %arg4[%c0_11, %c0_12] : memref<8x256xf32, #tpu.memory_space<vmem>>, vector<8x256xf32>
    tpu.vector_store %arg4[%c0_11, %c0_12], %45 {strides = array<i32>} : memref<8x256xf32, #tpu.memory_space<vmem>>, vector<8x256xf32>,
    return
  }
  func.func @transform_0(%arg0: i32) -> (i32, i32) {
    %c0_i32 = arith.constant 0 : i32
    %c0_i32_0 = arith.constant 0 : i32
    return %arg0, %c0_i32 : i32, i32
  }
  func.func @transform_1(%arg0: i32) -> (i32, i32) {
    %c0_i32 = arith.constant 0 : i32
    %c0_i32_0 = arith.constant 0 : i32
    %c0_i32_1 = arith.constant 0 : i32
    return %c0_i32, %c0_i32_0 : i32, i32
  }
  func.func @transform_2(%arg0: i32) -> (i32, i32) {
    %c0_i32 = arith.constant 0 : i32
    %c0_i32_0 = arith.constant 0 : i32
    %c0_i32_1 = arith.constant 0 : i32
    return %c0_i32, %c0_i32_0 : i32, i32
  }
  func.func @transform_3(%arg0: i32) -> (i32, i32) {
    %c0_i32 = arith.constant 0 : i32
    %c0_i32_0 = arith.constant 0 : i32
    return %arg0, %c0_i32 : i32, i32
  }
}

</mosaic_0001>

<bundles_post_ra>
// kernel: interface_forward.1
= control target key start
LH: loop header
LB: loop body
LE: loop exit
PB: predicated region body
PF: predicated region fallthrough
CT: control target
= control target key end

     0   :  { %8 = vsyncpa [#allocation3], 0  ;;  %s439_s0 = inlined_call_operand.hbm [shape: f32[8,100], index: 0, kind: input, shape index: {}]   ;;  %s440_s1 = inlined_call_operand.hbm [shape: f32[100,256], index: 1, kind: input, shape index: {}]   ;;  %s441_s2 = inlined_call_operand.vmem [shape: f32[1,256], index: 2, kind: input, shape index: {}]   ;;  %s442_s3 = inlined_call_operand.hbm [shape: f32[8,256], index: 3, kind: output, shape index: {}]  }
   0x1   :  { %9 = vsyncpa [#allocation6], 0 }
   0x2   :  { %10 = vsyncpa [#allocation4], 0  ;;  %s357_s12 = smov [#allocation2]   ;;  %s358_s14 = smov [#allocation5]  }
   0x3   :  { %s17_s13 = sshll.u32 %s357_s12, 4  ;;  %s26_s15 = sshll.u32 %s358_s14, 4  ;;  %s18_s13 = int_to_ptr.vmem [resolvable:$true] %s17_s13  ;;  %s383_s15 = int_to_ptr.vmem [resolvable:$true] %s26_s15 }
   0x4   :  { %s285_s18 = scalar_lea.hbm %s439_s0, 128 }
   0x5   :  { %p286_p0 = scmp.ne.s32.totalorder %s439_s0, %s285_s18  ;;  %p289_p1 = scmp.lt.u32.totalorder %s285_s18, %s439_s0 }
   0x7   :  { %p291_p2 = pnand %p289_p1, %p286_p0 }
   0x9   :  { %294 = shalt.err (!%p291_p2)
}
   0xa   :  { %s295_s23 = scalar_lea.vmem %s18_s13, 128  ;;  %p300_p4 = scmp.lt.s32.totalorder %s18_s13, %s18_s13 }
   0xb   :  { %p296_p3 = scmp.ne.s32.totalorder %s18_s13, %s295_s23  ;;  %p301_p5 = scmp.lt.s32.totalorder %s295_s23, %s295_s23 }
   0xd   :  { %p302_p6 = por %p301_p5, %p300_p4 }
   0xf   :  { %p303_p7 = pnand %p302_p6, %p296_p3 }
  0x11   :  { %306 = shalt.err (!%p303_p7)
}
  0x12   :  { %20 = dma.hbm_to_vmem [thread:$0]  %s439_s0, 128, %s18_s13, [#allocation3]  }
  0x13   :  { %s307_s28 = scalar_lea.hbm %s440_s1, 3328 }
  0x14   :  { %p308_p8 = scmp.ne.s32.totalorder %s440_s1, %s307_s28  ;;  %p311_p9 = scmp.lt.u32.totalorder %s307_s28, %s440_s1 }
  0x16   :  { %p313_p10 = pnand %p311_p9, %p308_p8 }
  0x18   :  { %316 = shalt.err (!%p313_p10)
}
  0x19   :  { %s317_s6 = scalar_lea.vmem %s383_s15, 3328  ;;  %p322_p12 = scmp.lt.s32.totalorder %s383_s15, %s383_s15 }
  0x1a   :  { %p318_p11 = scmp.ne.s32.totalorder %s383_s15, %s317_s6  ;;  %p323_p13 = scmp.lt.s32.totalorder %s317_s6, %s317_s6 }
  0x1c   :  { %p324_p0 = por %p323_p13, %p322_p12 }
  0x1e   :  { %p325_p1 = pnand %p324_p0, %p318_p11 }
  0x20   :  { %328 = shalt.err (!%p325_p1)
}
  0x21   :  { %s359_s0 = smov 256   ;;  %s360_s7 = smov 16  }
  0x22   :  { %32 = dma.hbm_to_vmem [thread:$0]  %s440_s1, 3328, %s383_s15, [#allocation6], %s359_s0, %s359_s0, %s360_s7  }
  0x23   :  { %351 = dma.done.wait [#allocation3], 128  }
  0x24   :  { %352 = vsyncadd [#allocation3], 4294967168 }
  0x25   :  { %353 = dma.done.wait [#allocation6], 3328  }
  0x26   :  { %354 = vsyncadd [#allocation6], 4294963968  ;;  %v361_v0 = vmov 0.0   ;;  %v43_v1 = vld [vmem:[#allocation5 + $0x8] sm:$0xff]  ;;  %v45_v2 = vld [vmem:[#allocation5 + $0x18] sm:$0xff]  ;;  %vm84_vm0 = vcmask 1043456   ;;  %v70_v40 = vlaneseq }
  0x27   :  { %155 = vmatprep.mubr.f32.mxu0 %v361_v0  ;;  %v42_v3 = vld [vmem:[#allocation5] sm:$0xff]  ;;  %v243_v4 = vpack.c.bf16 %v45_v2, %v43_v1  ;;  %v44_v5 = vld [vmem:[#allocation5 + $0x10] sm:$0xff]  ;;  %v47_v6 = vld [vmem:[#allocation5 + $0x28] sm:$0xff]  ;;  %vm80_vm1 = vcmask 818176  }
  0x28   :  { %v49_v7 = vld [vmem:[#allocation5 + $0x38] sm:$0xff]  ;;  %v245_v8 = vpack.c.bf16 %v44_v5, %v42_v3  ;;  %v46_v10 = vld [vmem:[#allocation5 + $0x20] sm:$0xff]  ;;  %v48_v11 = vld [vmem:[#allocation5 + $0x30] sm:$0xff]  ;;  %v71_v41 = vshrl.u32 %v70_v40, 7  ;;  %v163_v42 = vand.u32 127, %v70_v40 }
  0x29   :  { %v247_v9 = vpack.c.bf16 %v49_v7, %v47_v6  ;;  %v51_v12 = vld [vmem:[#allocation5 + $0x48] sm:$0xff]  ;;  %244 = vmatprep.subr.bf16.mxu0 %v243_v4  ;;  %v53_v13 = vld [vmem:[#allocation5 + $0x58] sm:$0xff]  ;;  %v249_v14 = vpack.c.bf16 %v48_v11, %v46_v10  ;;  %v50_v16 = vld [vmem:[#allocation5 + $0x40] sm:$0xff] }
  0x2a   :  { %246 = vmatpush1.bf16.msra.mxu0 %v245_v8  ;;  %v251_v15 = vpack.c.bf16 %v53_v13, %v51_v12  ;;  %v52_v17 = vld [vmem:[#allocation5 + $0x50] sm:$0xff]  ;;  %v55_v18 = vld [vmem:[#allocation5 + $0x68] sm:$0xff]  ;;  %v57_v19 = vld [vmem:[#allocation5 + $0x78] sm:$0xff]  ;;  %v72_v43 = vsub.s32 0, %v71_v41  ;;  %v76_v45 = vsub.s32 1, %v71_v41  ;;  %v164_v46 = vadd.s32 128, %v163_v42 }
  0x2b   :  { %248 = vmatprep.subr.bf16.mxu0 %v247_v9  ;;  %v253_v20 = vpack.c.bf16 %v52_v17, %v50_v16  ;;  %v255_v21 = vpack.c.bf16 %v57_v19, %v55_v18  ;;  %v54_v22 = vld [vmem:[#allocation5 + $0x60] sm:$0xff]  ;;  %v56_v23 = vld [vmem:[#allocation5 + $0x70] sm:$0xff]  ;;  %v59_v24 = vld [vmem:[#allocation5 + $0x88] sm:$0xff]  ;;  %vm165_vm5 = vcmp.ge.s32.totalorder %v163_v42, 98 }
  0x2c   :  { %v61_v25 = vld [vmem:[#allocation5 + $0x98] sm:$0xff]  ;;  %v257_v26 = vpack.c.bf16 %v56_v23, %v54_v22  ;;  %v58_v28 = vld [vmem:[#allocation5 + $0x80] sm:$0xff]  ;;  %v60_v29 = vld [vmem:[#allocation5 + $0x90] sm:$0xff]  ;;  %vm190_vm2 = vcmp.ge.s32.totalorder %v164_v46, 133  ;;  %vm192_vm3 = vcmp.lt.s32.totalorder %v164_v46, 136  ;;  %vm168_vm6 = vcmp.lt.s32.totalorder %v164_v46, 133 }
  0x2d   :  { %v259_v27 = vpack.c.bf16 %v61_v25, %v59_v24  ;;  %v63_v30 = vld [vmem:[#allocation5 + $0xa8] sm:$0xff]  ;;  %v65_v31 = vld [vmem:[#allocation5 + $0xb8] sm:$0xff]  ;;  %v261_v32 = vpack.c.bf16 %v60_v29, %v58_v28  ;;  %v62_v34 = vld [vmem:[#allocation5 + $0xa0] sm:$0xff] }
  0x2e   :  { %250 = vmatpush1.bf16.msra.mxu0 %v249_v14  ;;  %v263_v33 = vpack.c.bf16 %v65_v31, %v63_v30  ;;  %v64_v35 = vld [vmem:[#allocation5 + $0xb0] sm:$0xff]  ;;  %v67_v37 = vld [vmem:[#allocation5 + $0xc8] sm:$0xf]  ;;  %v66_v38 = vld [vmem:[#allocation5 + $0xc0] sm:$0xf] }
  0x2f   :  { %252 = vmatprep.subr.bf16.mxu0 %v251_v15  ;;  %v265_v36 = vpack.c.bf16 %v64_v35, %v62_v34  ;;  %v41_v39 = vld [vmem:[#allocation2] sm:$0xff]  ;;  %vm417_vm4 = vmand %vm190_vm2, %vm192_vm3 }
  0x30   :  { %v68_v44 = vld [vmem:[%s441_s2] sm:$0x3]  ;;  %s362_s2 = smov [#allocation7]  }
  0x31   :  { %v73_v47 = vrot.slane %v68_v44, %v72_v43  ;;  %v77_v48 = vrot.slane %v68_v44, %v76_v45  ;;  %s228_s11 = sshll.u32 %s362_s2, 4  ;;  %s229_s11 = int_to_ptr.vmem [resolvable:$true] %s228_s11 }
  0x32   :  { %254 = vmatpush1.bf16.msra.mxu0 %v253_v20  ;;  %s329_s12 = scalar_lea.vmem %s229_s11, 256  ;;  %p334_p3 = scmp.lt.s32.totalorder %s229_s11, %s229_s11 }
  0x33   :  { %256 = vmatprep.subr.bf16.mxu0 %v255_v21  ;;  %p330_p2 = scmp.ne.s32.totalorder %s229_s11, %s329_s12  ;;  %p335_p4 = scmp.lt.s32.totalorder %s329_s12, %s329_s12 }
  0x35   :  { %p336_p5 = por %p335_p4, %p334_p3 }
  0x36   :  { %258 = vmatpush1.bf16.msra.mxu0 %v257_v26 }
  0x37   :  { %260 = vmatprep.subr.bf16.mxu0 %v259_v27  ;;  %p337_p6 = pnand %p336_p5, %p330_p2 }
  0x3a   :  { %262 = vmatpush1.bf16.msra.mxu0 %v261_v32 }
  0x3b   :  { %264 = vmatprep.subr.bf16.mxu0 %v263_v33 }
  0x3e   :  { %266 = vmatpush1.bf16.msra.mxu0 %v265_v36 }
  0x3f   :  { %238 = vmatprep.subr.msk.mxu0 %vm84_vm0, %v67_v37 }
  0x42   :  { %239 = vmatpush1.msk.msra.mxu0 %vm84_vm0, %v66_v38 }
  0x43   :  { %240 = vmatmul.mubr.msk.f32.vlgmr.msra.gmra.mrb[0].mxu0 %vm80_vm1, %v41_v39 }
 0x116   :  { %v157_v49 = vpop.f32.mrb[0].mxu0 }
 0x117   :  { %v158_v50 = vadd.f32 %v157_v49, %v73_v47  ;;  %v159_v51 = vpop.f32.mrb[1].mxu0 }
 0x118   :  { %v160_v53 = vadd.f32 %v159_v51, %v77_v48 }
 0x119   :  { %v241_v54 = vmul.f32 -1.442695, %v158_v50 }
 0x11a   :  { %v242_v55 = vmul.f32 -1.442695, %v160_v53  ;;  %v200_v56 = vsel %vm417_vm4, %v160_v53, -inf }
 0x11b   :  { %273 = vpow2.f32 %v241_v54  ;;  %202 = vmax.xlane.f32.xlu0 %v200_v56 }
 0x11c   :  { %275 = vpow2.f32 %v242_v55 }
 0x125   :  { %v274_v57 = vpop.eup %273 }
 0x126   :  { %v276_v58 = vpop.eup %275  ;;  %v177_v59 = vadd.f32 1.0, %v274_v57 }
 0x127   :  { %v178_v60 = vadd.f32 1.0, %v276_v58 }
 0x128   :  { %277 = vrcp.f32 %v177_v59 }
 0x129   :  { %279 = vrcp.f32 %v178_v60 }
 0x132   :  { %v278_v61 = vpop.eup %277 }
 0x133   :  { %v280_v62 = vpop.eup %279  ;;  %v187_v63 = vsel %vm165_vm5, %v278_v61, %v158_v50 }
 0x134   :  { %v188_v0 = vsel %vm168_vm6, %v280_v62, %v160_v53  ;;  %220 = vst [vmem:[#allocation7] sm:$0xff] %v187_v63 }
 0x1a8   :  { %v203_v1 = vpop.xlane.xlu0 %202 }
 0x1a9   :  { %v205_v2 = vsub.f32 %v200_v56, %v203_v1 }
 0x1ab   :  { %v208_v3 = vmul.f32 1.442695, %v205_v2 }
 0x1ad   :  { %281 = vpow2.f32 %v208_v3 }
 0x1b7   :  { %v282_v4 = vpop.eup %281 }
 0x1b8   :  { %v211_v5 = vsel %vm417_vm4, %v282_v4, 0.0 }
 0x1b9   :  { %213 = vadd.xlane.f32.xlu0 %v211_v5 }
 0x246   :  { %v214_v6 = vpop.xlane.xlu0 %213 }
 0x247   :  { %283 = vrcp.f32 %v214_v6 }
 0x251   :  { %v284_v7 = vpop.eup %283 }
 0x252   :  { %v217_v8 = vmul.f32 %v284_v7, %v211_v5 }
 0x254   :  { %v219_v9 = vsel %vm417_vm4, %v217_v8, %v188_v0 }
 0x255   :  { %221 = vst [vmem:[#allocation7 + $0x8] sm:$0xff] %v219_v9 }
 0x256   :  { %340 = shalt.err (!%p337_p6)
}
 0x257   :  { %s341_s15 = scalar_lea.hbm %s442_s3, 256 }
 0x258   :  { %p342_p7 = scmp.ne.s32.totalorder %s442_s3, %s341_s15  ;;  %p345_p8 = scmp.lt.u32.totalorder %s341_s15, %s442_s3 }
 0x25a   :  { %p347_p9 = pnand %p345_p8, %p342_p7 }
 0x25c   :  { %350 = shalt.err (!%p347_p9)
}
 0x25d   :  { %231 = dma.vmem_to_hbm [thread:$0]  %s229_s11, 256, %s442_s3, [#allocation4]  }
 0x25e   :  { %355 = dma.done.wait [#allocation4], 256  }
 0x25f   :  { %356 = vsyncadd [#allocation4], 4294967040 }
 0x260   :  { %235 = vsyncpa [#allocation3], 1 }
 0x261   :  { %236 = vsyncpa [#allocation6], 1 }
 0x262   :  { %237 = vsyncpa [#allocation4], 1 }

</bundles_post_ra>
